<compile_context>
chip_gen: v5e
topology: v5e:2x2
jax: 0.10.0
libtpu: 0.0.40
codegen_flags: <defaults>
</compile_context>

<pallas_src>
import functools

import jax
import jax.numpy as jnp
from jax import lax
from jax.experimental import pallas as pl
from jax.experimental.pallas import tpu as pltpu

_LANE = 128


def _round_up(v, m):
    return ((v + m - 1) // m) * m


def _pad2d(a, rows, cols):
    r, c = a.shape
    if r == rows and c == cols:
        return a
    return jnp.pad(a, ((0, rows - r), (0, cols - c)))


def _vmem_limit_bytes():
    # min(100 MiB, 75% of physical per-core VMEM):
    #   v5e/v6e (128 MiB physical) -> 96 MiB, v7x (64 MiB physical) -> 48 MiB.
    try:
        cap = pltpu.get_tpu_info().vmem_capacity_bytes
    except Exception:
        cap = 64 << 20
    return int(min(100 << 20, (cap * 3) // 4))


def _pick_tile(n, candidates=(512, 256, 128)):
    # n is always a multiple of 128 here, so this terminates on 128 at worst.
    for t in candidates:
        if n >= t and n % t == 0:
            return t
    return n


# --------------------------------------------------------------------------
# Kernels
# --------------------------------------------------------------------------
def _make_adj_matmul_kernel(compute_dtype, fuse_w):
    """out[i] = sum_k adj[i,k] @ rhs[k]   (optionally @ W on the last k step)."""
    f32 = jnp.float32

    def _body(adj_ref, rhs_ref, w_ref, out_ref, acc_ref):
        k = pl.program_id(1)

        @pl.when(k == 0)
        def _():
            acc_ref[...] = jnp.zeros_like(acc_ref)

        acc_ref[...] += jnp.dot(adj_ref[...], rhs_ref[...],
                                preferred_element_type=f32)

        @pl.when(k == pl.num_programs(1) - 1)
        def _():
            acc = acc_ref[...]
            if fuse_w:
                acc = jnp.dot(acc.astype(compute_dtype), w_ref[...],
                              preferred_element_type=f32)
            out_ref[...] = acc.astype(out_ref.dtype)

    if fuse_w:
        def kernel(adj_ref, rhs_ref, w_ref, out_ref, acc_ref):
            _body(adj_ref, rhs_ref, w_ref, out_ref, acc_ref)
    else:
        def kernel(adj_ref, rhs_ref, out_ref, acc_ref):
            _body(adj_ref, rhs_ref, None, out_ref, acc_ref)
    return kernel


def _feat_w_kernel(feat_ref, w_ref, out_ref):
    out_ref[...] = jnp.dot(feat_ref[...], w_ref[...],
                           preferred_element_type=jnp.float32
                           ).astype(out_ref.dtype)


def _adj_recon_kernel(zs_i_ref, zs_j_ref, zh_i_ref, zh_j_ref, out_ref):
    f32 = jnp.float32
    dn = (((1,), (1,)), ((), ()))  # contract last dims of both operands
    s1 = lax.dot_general(zs_i_ref[...], zs_j_ref[...], dn,
                         preferred_element_type=f32)
    s2 = lax.dot_general(zh_i_ref[...], zh_j_ref[...], dn,
                         preferred_element_type=f32)
    # sigmoid(a) + sigmoid(b) == 0.5*(tanh(a/2) + tanh(b/2)) + 1
    # -> one EUP op per sigmoid (inputs stay f32; v5e EUP has no bf16),
    #    and the output tile is written exactly once (no read-modify-write).
    out_ref[...] = 0.5 * (jnp.tanh(0.5 * s1) + jnp.tanh(0.5 * s2)) + 1.0


# --------------------------------------------------------------------------
# Per-layer / reconstruction wrappers
# --------------------------------------------------------------------------
def _gnn_layer(z, adj_p, w, compute_dtype, vmem_limit):
    """One padded GNN layer: adj_p @ z @ w, accumulated in f32."""
    N_p = adj_p.shape[0]
    in_p, out_p = w.shape
    bpe = jnp.dtype(compute_dtype).itemsize
    tm = _pick_tile(N_p)
    tk = _pick_tile(N_p)

    fuse_w = out_p >= in_p  # expanding layer: (adj @ feat) @ W, single call
    if fuse_w:
        rhs, rhs_w = z, in_p
    else:
        # Contracting layer: adj @ (feat @ W).  Tiny row-parallel support call
        # so the big adj matmul contracts against the narrower width.
        rhs_w = out_p
        rhs = pl.pallas_call(
            _feat_w_kernel,
            out_shape=jax.ShapeDtypeStruct((N_p, out_p), compute_dtype),
            grid=(N_p // tm,),
            in_specs=[pl.BlockSpec((tm, in_p), lambda i: (i, 0)),
                      pl.BlockSpec((in_p, out_p), lambda i: (0, 0))],
            out_specs=pl.BlockSpec((tm, out_p), lambda i: (i, 0)),
            compiler_params=pltpu.CompilerParams(
                dimension_semantics=("parallel",),
                vmem_limit_bytes=vmem_limit),
            cost_estimate=pl.CostEstimate(
                flops=int(2 * N_p * in_p * out_p), transcendentals=0,
                bytes_accessed=int(bpe * (N_p * in_p + in_p * out_p
                                          + N_p * out_p))),
        )(z, w)

    grid = (N_p // tm, N_p // tk)
    in_specs = [pl.BlockSpec((tm, tk), lambda i, k: (i, k)),
                pl.BlockSpec((tk, rhs_w), lambda i, k: (k, 0))]
    operands = [adj_p, rhs]
    if fuse_w:
        in_specs.append(pl.BlockSpec((in_p, out_p), lambda i, k: (0, 0)))
        operands.append(w)

    flops = 2 * N_p * N_p * rhs_w + (2 * N_p * in_p * out_p if fuse_w else 0)
    bytes_acc = bpe * (N_p * N_p + grid[0] * N_p * rhs_w + N_p * out_p
                       + (in_p * out_p if fuse_w else 0))
    return pl.pallas_call(
        _make_adj_matmul_kernel(compute_dtype, fuse_w),
        out_shape=jax.ShapeDtypeStruct((N_p, out_p), compute_dtype),
        grid=grid,
        in_specs=in_specs,
        out_specs=pl.BlockSpec((tm, out_p), lambda i, k: (i, 0)),
        scratch_shapes=[pltpu.VMEM((tm, rhs_w), jnp.float32)],
        compiler_params=pltpu.CompilerParams(
            dimension_semantics=("parallel", "arbitrary"),
            vmem_limit_bytes=vmem_limit),
        cost_estimate=pl.CostEstimate(flops=int(flops), transcendentals=0,
                                      bytes_accessed=int(bytes_acc)),
    )(*operands)


def _adj_recon(zs, zh, vmem_limit):
    N_p, Ps = zs.shape
    Ph = zh.shape[1]
    bpe = jnp.dtype(zs.dtype).itemsize
    tm = _pick_tile(N_p, (512, 256, 128))
    tn = _pick_tile(N_p, (1024, 512, 256, 128))  # lane-dense, fewer grid steps
    grid = (N_p // tm, N_p // tn)
    # TODO(synk): adj_hat is symmetric; a j>=i-only grid plus a mirrored
    # (XLU-transposed) tile write would halve kernel-B MXU/EUP work.
    flops = 2 * N_p * N_p * (Ps + Ph)
    bytes_acc = bpe * (grid[0] + 1) * N_p * (Ps + Ph) + 4 * N_p * N_p
    return pl.pallas_call(
        _adj_recon_kernel,
        out_shape=jax.ShapeDtypeStruct((N_p, N_p), jnp.float32),
        grid=grid,
        in_specs=[pl.BlockSpec((tm, Ps), lambda i, j: (i, 0)),
                  pl.BlockSpec((tn, Ps), lambda i, j: (j, 0)),
                  pl.BlockSpec((tm, Ph), lambda i, j: (i, 0)),
                  pl.BlockSpec((tn, Ph), lambda i, j: (j, 0))],
        out_specs=pl.BlockSpec((tm, tn), lambda i, j: (i, j)),
        compiler_params=pltpu.CompilerParams(
            dimension_semantics=("parallel", "parallel"),
            vmem_limit_bytes=vmem_limit),
        cost_estimate=pl.CostEstimate(flops=int(flops),
                                      transcendentals=int(2 * N_p * N_p),
                                      bytes_accessed=int(bytes_acc)),
    )(zs, zs, zh, zh)


# --------------------------------------------------------------------------
# Forward
# --------------------------------------------------------------------------
@functools.partial(jax.jit, static_argnames=("compute_dtype",))
def sgae_forward(x, adj, weights, compute_dtype=jnp.float32):
    """SGAE forward: x (N, n_input), adj (N, N), weights = (w1..w6).

    Returns (z_sgae, z_hat, adj_hat) in float32.
    """
    N, n_input = x.shape
    enc3 = weights[2].shape[1]
    vmem_limit = _vmem_limit_bytes()

    # Zero-pad N and every feature width up to multiples of 128 so every tile
    # is (8,128)-aligned and every store is lane-dense.  Zero rows/cols stay
    # exactly zero through every layer, so the math is unchanged.
    N_p = _round_up(N, _LANE)
    x_p = _pad2d(x, N_p, _round_up(n_input, _LANE)).astype(compute_dtype)
    adj_p = _pad2d(adj, N_p, N_p).astype(compute_dtype)
    w_p = tuple(_pad2d(w, _round_up(w.shape[0], _LANE),
                          _round_up(w.shape[1], _LANE)).astype(compute_dtype)
                for w in weights)

    z = x_p
    z_sgae_p = None
    for k, w in enumerate(w_p):          # encoder (0..2) + decoder (3..5)
        z = _gnn_layer(z, adj_p, w, compute_dtype, vmem_limit)
        if k == 2:
            z_sgae_p = z
    z_hat_p = z

    adj_hat_p = _adj_recon(z_sgae_p, z_hat_p, vmem_limit)

    z_sgae = z_sgae_p[:N, :enc3].astype(jnp.float32)
    z_hat = z_hat_p[:N, :n_input].astype(jnp.float32)
    return z_sgae, z_hat, adj_hat_p[:N, :N]


# --------------------------------------------------------------------------
# Reference + test
# --------------------------------------------------------------------------
def _xavier_uniform(key, fan_in, fan_out):
    bound = jnp.sqrt(6.0 / (fan_in + fan_out)).astype(jnp.float32)
    return jax.random.uniform(key, (fan_in, fan_out), jnp.float32,
                              minval=-bound, maxval=bound)


def _reference_forward(x, adj, weights):
    """Pure-JAX reference mirroring the PyTorch forward."""
    w1, w2, w3, w4, w5, w6 = weights
    gnn = lambda f, w: adj @ (f @ w)
    z_sgae = gnn(gnn(gnn(x, w1), w2), w3)
    z_sgae_adj = jax.nn.sigmoid(z_sgae @ z_sgae.T)
    z_hat = gnn(gnn(gnn(z_sgae, w4), w5), w6)
    z_hat_adj = jax.nn.sigmoid(z_hat @ z_hat.T)
    return z_sgae, z_hat, z_sgae_adj + z_hat_adj


if __name__ == "__main__":
    # Small, module-consistent sizes.
    N = 64          # number of graph nodes
    n_input = 32
    gae_n_enc_1, gae_n_enc_2, gae_n_enc_3 = 64, 32, 16
    gae_n_dec_1, gae_n_dec_2, gae_n_dec_3 = 16, 32, 64

    key = jax.random.PRNGKey(0)
    kx, kadj, k1, k2, k3, k4, k5, k6 = jax.random.split(key, 8)

    x = jax.random.normal(kx, (N, n_input), jnp.float32)
    # Symmetric, row-normalized dense adjacency.
    a = jax.random.uniform(kadj, (N, N), jnp.float32)
    adj = (a + a.T) * 0.5
    adj = adj / jnp.sum(adj, axis=1, keepdims=True)

    weights = (
        _xavier_uniform(k1, n_input, gae_n_enc_1),
        _xavier_uniform(k2, gae_n_enc_1, gae_n_enc_2),
        _xavier_uniform(k3, gae_n_enc_2, gae_n_enc_3),
        _xavier_uniform(k4, gae_n_dec_1, gae_n_dec_2),
        _xavier_uniform(k5, gae_n_dec_2, gae_n_dec_3),
        _xavier_uniform(k6, gae_n_dec_3, n_input),
    )

    r_sgae, r_hat, r_adj = _reference_forward(x, adj, weights)

    # f32-operand path: must match the PyTorch-equivalent reference tightly.
    z_sgae, z_hat, adj_hat = jax.block_until_ready(
        sgae_forward(x, adj, weights))
    assert jnp.allclose(z_sgae, r_sgae, atol=1e-4, rtol=1e-4)
    assert jnp.allclose(z_hat, r_hat, atol=1e-4, rtol=1e-4)
    assert jnp.allclose(adj_hat, r_adj, atol=1e-4, rtol=1e-4)

    # bf16-operand / f32-accumulate path (v6e/v7x MXU rate, half the HBM/VMEM
    # traffic for adj/x/weights/z); loose sanity check vs the f32 reference.
    # Note: embeddings (not just adj_hat) carry the compounded bf16 error.
    zb_sgae, zb_hat, adjb_hat = jax.block_until_ready(
        sgae_forward(x, adj, weights, compute_dtype=jnp.bfloat16))
    assert jnp.allclose(zb_sgae, r_sgae, atol=1e-1, rtol=1e-1)
    assert jnp.allclose(zb_hat, r_hat, atol=1e-1, rtol=1e-1)
    assert jnp.allclose(adjb_hat, r_adj, atol=1e-1, rtol=1e-1)

    print("KERNEL_OK")
</pallas_src>

<mosaic_0001>
module attributes {stable_mosaic.version = 11 : i64} {
  func.func @kernel(%arg0: i32, %arg1: i32, %arg2: memref<128x128xf32, #tpu.memory_space<vmem>>, %arg3: memref<128x128xf32, #tpu.memory_space<vmem>>, %arg4: memref<128x128xf32, #tpu.memory_space<vmem>>, %arg5: memref<128x128xf32, #tpu.memory_space<vmem>>, %arg6: memref<128x128xf32, #tpu.memory_space<vmem>>) attributes {dimension_semantics = [#tpu.dimension_semantics<parallel>, #tpu.dimension_semantics<arbitrary>], iteration_bounds = array<i64: 1, 1>, scalar_prefetch = 0 : i64, scratch_operands = 1 : i64, tpu.core_type = #tpu.core_type<tc>, window_params = [{transform_indices = @transform_0, window_bounds = array<i64: 128, 128>}, {transform_indices = @transform_1, window_bounds = array<i64: 128, 128>}, {pipeline_mode = #tpu.pipeline_mode<synchronous>, transform_indices = @transform_2, window_bounds = array<i64: 128, 128>}, {transform_indices = @transform_3, window_bounds = array<i64: 128, 128>}]} {
    %c0_i32 = arith.constant 0 : i32
    %0 = arith.cmpi eq, %arg1, %c0_i32 : i32
    %1 = arith.extui %0 : i1 to i32
    %c0_i32_0 = arith.constant 0 : i32
    %2 = arith.cmpi ne, %1, %c0_i32_0 : i32
    scf.if %2 {
      %cst_10 = arith.constant 0.000000e+00 : f32
      %12 = vector.broadcast %cst_10 : f32 to vector<128x128xf32>
      %c0_11 = arith.constant 0 : index
      %c0_12 = arith.constant 0 : index
      %13 = vector.load %arg6[%c0_11, %c0_12] : memref<128x128xf32, #tpu.memory_space<vmem>>, vector<128x128xf32>
      tpu.vector_store %arg6[%c0_11, %c0_12], %12 {strides = array<i32>} : memref<128x128xf32, #tpu.memory_space<vmem>>, vector<128x128xf32>,
    } else {
    }
    %c0 = arith.constant 0 : index
    %c0_1 = arith.constant 0 : index
    %3 = vector.load %arg6[%c0, %c0_1] : memref<128x128xf32, #tpu.memory_space<vmem>>, vector<128x128xf32>
    %c0_2 = arith.constant 0 : index
    %c0_3 = arith.constant 0 : index
    %4 = vector.load %arg2[%c0_2, %c0_3] : memref<128x128xf32, #tpu.memory_space<vmem>>, vector<128x128xf32>
    %c0_4 = arith.constant 0 : index
    %c0_5 = arith.constant 0 : index
    %5 = vector.load %arg3[%c0_4, %c0_5] : memref<128x128xf32, #tpu.memory_space<vmem>>, vector<128x128xf32>
    %cst = arith.constant dense<0.000000e+00> : vector<128x128xf32>
    %6 = tpu.matmul %4, %5, %cst {dimension_numbers = #tpu.dot_dimension_numbers<[1], [0], [0], [1], [0, 0, 1, 1], [], []>} : vector<128x128xf32>, vector<128x128xf32>, vector<128x128xf32> -> vector<128x128xf32>
    %7 = arith.addf %3, %6 : vector<128x128xf32>
    %c0_6 = arith.constant 0 : index
    %c0_7 = arith.constant 0 : index
    %8 = vector.load %arg6[%c0_6, %c0_7] : memref<128x128xf32, #tpu.memory_space<vmem>>, vector<128x128xf32>
    tpu.vector_store %arg6[%c0_6, %c0_7], %7 {strides = array<i32>} : memref<128x128xf32, #tpu.memory_space<vmem>>, vector<128x128xf32>,
    %c0_i32_8 = arith.constant 0 : i32
    %9 = arith.cmpi eq, %arg1, %c0_i32_8 : i32
    %10 = arith.extui %9 : i1 to i32
    %c0_i32_9 = arith.constant 0 : i32
    %11 = arith.cmpi ne, %10, %c0_i32_9 : i32
    scf.if %11 {
      %c0_10 = arith.constant 0 : index
      %c0_11 = arith.constant 0 : index
      %12 = vector.load %arg6[%c0_10, %c0_11] : memref<128x128xf32, #tpu.memory_space<vmem>>, vector<128x128xf32>
      %c0_12 = arith.constant 0 : index
      %c0_13 = arith.constant 0 : index
      %13 = vector.load %arg4[%c0_12, %c0_13] : memref<128x128xf32, #tpu.memory_space<vmem>>, vector<128x128xf32>
      %cst_14 = arith.constant dense<0.000000e+00> : vector<128x128xf32>
      %14 = tpu.matmul %12, %13, %cst_14 {dimension_numbers = #tpu.dot_dimension_numbers<[1], [0], [0], [1], [0, 0, 1, 1], [], []>} : vector<128x128xf32>, vector<128x128xf32>, vector<128x128xf32> -> vector<128x128xf32>
      %c0_15 = arith.constant 0 : index
      %c0_16 = arith.constant 0 : index
      %15 = vector.load %arg5[%c0_15, %c0_16] : memref<128x128xf32, #tpu.memory_space<vmem>>, vector<128x128xf32>
      tpu.vector_store %arg5[%c0_15, %c0_16], %14 {strides = array<i32>} : memref<128x128xf32, #tpu.memory_space<vmem>>, vector<128x128xf32>,
    } else {
    }
    return
  }
  func.func @transform_0(%arg0: i32, %arg1: i32) -> (i32, i32) {
    %c0_i32 = arith.constant 0 : i32
    return %arg0, %arg1 : i32, i32
  }
  func.func @transform_1(%arg0: i32, %arg1: i32) -> (i32, i32) {
    %c0_i32 = arith.constant 0 : i32
    %c0_i32_0 = arith.constant 0 : i32
    return %arg1, %c0_i32 : i32, i32
  }
  func.func @transform_2(%arg0: i32, %arg1: i32) -> (i32, i32) {
    %c0_i32 = arith.constant 0 : i32
    %c0_i32_0 = arith.constant 0 : i32
    %c0_i32_1 = arith.constant 0 : i32
    return %c0_i32, %c0_i32_0 : i32, i32
  }
  func.func @transform_3(%arg0: i32, %arg1: i32) -> (i32, i32) {
    %c0_i32 = arith.constant 0 : i32
    %c0_i32_0 = arith.constant 0 : i32
    return %arg0, %c0_i32 : i32, i32
  }
}

module attributes {stable_mosaic.version = 11 : i64} {
  func.func @_adj_recon_kernel(%arg0: i32, %arg1: i32, %arg2: memref<128x128xf32, #tpu.memory_space<vmem>>, %arg3: memref<128x128xf32, #tpu.memory_space<vmem>>, %arg4: memref<128x128xf32, #tpu.memory_space<vmem>>, %arg5: memref<128x128xf32, #tpu.memory_space<vmem>>, %arg6: memref<128x128xf32, #tpu.memory_space<vmem>>) attributes {dimension_semantics = [#tpu.dimension_semantics<parallel>, #tpu.dimension_semantics<parallel>], iteration_bounds = array<i64: 1, 1>, scalar_prefetch = 0 : i64, scratch_operands = 0 : i64, tpu.core_type = #tpu.core_type<tc>, window_params = [{transform_indices = @transform_0, window_bounds = array<i64: 128, 128>}, {transform_indices = @transform_1, window_bounds = array<i64: 128, 128>}, {transform_indices = @transform_2, window_bounds = array<i64: 128, 128>}, {transform_indices = @transform_3, window_bounds = array<i64: 128, 128>}, {transform_indices = @transform_4, window_bounds = array<i64: 128, 128>}]} {
    %c0 = arith.constant 0 : index
    %c0_0 = arith.constant 0 : index
    %0 = vector.load %arg2[%c0, %c0_0] : memref<128x128xf32, #tpu.memory_space<vmem>>, vector<128x128xf32>
    %c0_1 = arith.constant 0 : index
    %c0_2 = arith.constant 0 : index
    %1 = vector.load %arg3[%c0_1, %c0_2] : memref<128x128xf32, #tpu.memory_space<vmem>>, vector<128x128xf32>
    %cst = arith.constant dense<0.000000e+00> : vector<128x128xf32>
    %2 = tpu.matmul %0, %1, %cst {dimension_numbers = #tpu.dot_dimension_numbers<[1], [1], [0], [0], [0, 0, 1, 0], [], []>} : vector<128x128xf32>, vector<128x128xf32>, vector<128x128xf32> -> vector<128x128xf32>
    %c0_3 = arith.constant 0 : index
    %c0_4 = arith.constant 0 : index
    %3 = vector.load %arg4[%c0_3, %c0_4] : memref<128x128xf32, #tpu.memory_space<vmem>>, vector<128x128xf32>
    %c0_5 = arith.constant 0 : index
    %c0_6 = arith.constant 0 : index
    %4 = vector.load %arg5[%c0_5, %c0_6] : memref<128x128xf32, #tpu.memory_space<vmem>>, vector<128x128xf32>
    %cst_7 = arith.constant dense<0.000000e+00> : vector<128x128xf32>
    %5 = tpu.matmul %3, %4, %cst_7 {dimension_numbers = #tpu.dot_dimension_numbers<[1], [1], [0], [0], [0, 0, 1, 0], [], []>} : vector<128x128xf32>, vector<128x128xf32>, vector<128x128xf32> -> vector<128x128xf32>
    %cst_8 = arith.constant 5.000000e-01 : f32
    %6 = vector.broadcast %cst_8 : f32 to vector<128x128xf32>
    %7 = arith.mulf %6, %2 : vector<128x128xf32>
    %8 = math.tanh %7 : vector<128x128xf32>
    %cst_9 = arith.constant 5.000000e-01 : f32
    %9 = vector.broadcast %cst_9 : f32 to vector<128x128xf32>
    %10 = arith.mulf %9, %5 : vector<128x128xf32>
    %11 = math.tanh %10 : vector<128x128xf32>
    %12 = arith.addf %8, %11 : vector<128x128xf32>
    %cst_10 = arith.constant 5.000000e-01 : f32
    %13 = vector.broadcast %cst_10 : f32 to vector<128x128xf32>
    %14 = arith.mulf %13, %12 : vector<128x128xf32>
    %cst_11 = arith.constant 1.000000e+00 : f32
    %15 = vector.broadcast %cst_11 : f32 to vector<128x128xf32>
    %16 = arith.addf %14, %15 : vector<128x128xf32>
    %c0_12 = arith.constant 0 : index
    %c0_13 = arith.constant 0 : index
    %17 = vector.load %arg6[%c0_12, %c0_13] : memref<128x128xf32, #tpu.memory_space<vmem>>, vector<128x128xf32>
    tpu.vector_store %arg6[%c0_12, %c0_13], %16 {strides = array<i32>} : memref<128x128xf32, #tpu.memory_space<vmem>>, vector<128x128xf32>,
    return
  }
  func.func @transform_0(%arg0: i32, %arg1: i32) -> (i32, i32) {
    %c0_i32 = arith.constant 0 : i32
    %c0_i32_0 = arith.constant 0 : i32
    return %arg0, %c0_i32 : i32, i32
  }
  func.func @transform_1(%arg0: i32, %arg1: i32) -> (i32, i32) {
    %c0_i32 = arith.constant 0 : i32
    %c0_i32_0 = arith.constant 0 : i32
    return %arg1, %c0_i32 : i32, i32
  }
  func.func @transform_2(%arg0: i32, %arg1: i32) -> (i32, i32) {
    %c0_i32 = arith.constant 0 : i32
    %c0_i32_0 = arith.constant 0 : i32
    return %arg0, %c0_i32 : i32, i32
  }
  func.func @transform_3(%arg0: i32, %arg1: i32) -> (i32, i32) {
    %c0_i32 = arith.constant 0 : i32
    %c0_i32_0 = arith.constant 0 : i32
    return %arg1, %c0_i32 : i32, i32
  }
  func.func @transform_4(%arg0: i32, %arg1: i32) -> (i32, i32) {
    %c0_i32 = arith.constant 0 : i32
    return %arg0, %arg1 : i32, i32
  }
}

</mosaic_0001>

<bundles_post_ra>
// kernel: sgae_forward.7
= control target key start
LH: loop header
LB: loop body
LE: loop exit
PB: predicated region body
PF: predicated region fallthrough
CT: control target
= control target key end

     0   :  { %s543_s1 = inlined_call_operand.vmem [shape: f32[128,128], index: 1, kind: input, shape index: {}]   ;;  %s544_s0 = inlined_call_operand.vmem [shape: f32[128,128], index: 0, kind: input, shape index: {}]   ;;  %s545_s2 = inlined_call_operand.vmem [shape: f32[128,128], index: 2, kind: input, shape index: {}]   ;;  %s546_s3 = inlined_call_operand.vmem [shape: f32[128,128], index: 3, kind: output, shape index: {}]  }
   0x1   :  { %v81_v0 = vld [vmem:[%s543_s1 + $0x78] sm:$0xff]  ;;  %v80_v1 = vld [vmem:[%s543_s1 + $0x70] sm:$0xff]  ;;  %v79_v2 = vld [vmem:[%s543_s1 + $0x68] sm:$0xff] }
   0x2   :  { %299 = vmatpush.msra.mxu2 %v81_v0  ;;  %82 = vmatpush.msra.mxu0 %v81_v0  ;;  %v78_v3 = vld [vmem:[%s543_s1 + $0x60] sm:$0xff]  ;;  %v77_v4 = vld [vmem:[%s543_s1 + $0x58] sm:$0xff]  ;;  %v76_v5 = vld [vmem:[%s543_s1 + $0x50] sm:$0xff] }
   0x3   :  { %v75_v6 = vld [vmem:[%s543_s1 + $0x48] sm:$0xff]  ;;  %v74_v7 = vld [vmem:[%s543_s1 + $0x40] sm:$0xff]  ;;  %v73_v8 = vld [vmem:[%s543_s1 + $0x38] sm:$0xff] }
   0x4   :  { %300 = vmatpush.msra.mxu2 %v80_v1  ;;  %83 = vmatpush.msra.mxu0 %v80_v1  ;;  %v72_v9 = vld [vmem:[%s543_s1 + $0x30] sm:$0xff]  ;;  %v71_v10 = vld [vmem:[%s543_s1 + $0x28] sm:$0xff]  ;;  %v70_v11 = vld [vmem:[%s543_s1 + $0x20] sm:$0xff] }
   0x5   :  { %v69_v12 = vld [vmem:[%s543_s1 + $0x18] sm:$0xff]  ;;  %v68_v13 = vld [vmem:[%s543_s1 + $0x10] sm:$0xff]  ;;  %v67_v14 = vld [vmem:[%s543_s1 + $0x8] sm:$0xff] }
   0x6   :  { %301 = vmatpush.msra.mxu2 %v79_v2  ;;  %84 = vmatpush.msra.mxu0 %v79_v2  ;;  %v66_v15 = vld [vmem:[%s543_s1] sm:$0xff]  ;;  %v59_v18 = vld [vmem:[%s544_s0 + $0x48] sm:$0xff]  ;;  %v60_v20 = vld [vmem:[%s544_s0 + $0x50] sm:$0xff] }
   0x7   :  { %v58_v16 = vld [vmem:[%s544_s0 + $0x40] sm:$0xff]  ;;  %v51_v19 = vld [vmem:[%s544_s0 + $0x8] sm:$0xff]  ;;  %v52_v21 = vld [vmem:[%s544_s0 + $0x10] sm:$0xff] }
   0x8   :  { %302 = vmatpush.msra.mxu2 %v78_v3  ;;  %85 = vmatpush.msra.mxu0 %v78_v3  ;;  %v50_v17 = vld [vmem:[%s544_s0] sm:$0xff]  ;;  %v61_v22 = vld [vmem:[%s544_s0 + $0x58] sm:$0xff]  ;;  %v212_v25 = vld [vmem:[%s545_s2 + $0x70] sm:$0xff] }
   0x9   :  { %v53_v23 = vld [vmem:[%s544_s0 + $0x18] sm:$0xff]  ;;  %v211_v26 = vld [vmem:[%s545_s2 + $0x68] sm:$0xff]  ;;  %v210_v27 = vld [vmem:[%s545_s2 + $0x60] sm:$0xff] }
   0xa   :  { %303 = vmatpush.msra.mxu2 %v77_v4  ;;  %86 = vmatpush.msra.mxu0 %v77_v4  ;;  %v213_v24 = vld [vmem:[%s545_s2 + $0x78] sm:$0xff]  ;;  %v62_v28 = vld [vmem:[%s544_s0 + $0x60] sm:$0xff]  ;;  %v208_v31 = vld [vmem:[%s545_s2 + $0x50] sm:$0xff] }
   0xb   :  { %315 = vmatpush.msra.mxu3 %v213_v24  ;;  %214 = vmatpush.msra.mxu1 %v213_v24  ;;  %v54_v29 = vld [vmem:[%s544_s0 + $0x20] sm:$0xff]  ;;  %v209_v30 = vld [vmem:[%s545_s2 + $0x58] sm:$0xff]  ;;  %v207_v32 = vld [vmem:[%s545_s2 + $0x48] sm:$0xff] }
   0xc   :  { %304 = vmatpush.msra.mxu2 %v76_v5  ;;  %87 = vmatpush.msra.mxu0 %v76_v5  ;;  %v206_v33 = vld [vmem:[%s545_s2 + $0x40] sm:$0xff]  ;;  %v63_v34 = vld [vmem:[%s544_s0 + $0x68] sm:$0xff]  ;;  %v205_v36 = vld [vmem:[%s545_s2 + $0x38] sm:$0xff] }
   0xd   :  { %316 = vmatpush.msra.mxu3 %v212_v25  ;;  %215 = vmatpush.msra.mxu1 %v212_v25  ;;  %v55_v35 = vld [vmem:[%s544_s0 + $0x28] sm:$0xff]  ;;  %v204_v37 = vld [vmem:[%s545_s2 + $0x30] sm:$0xff]  ;;  %v202_v39 = vld [vmem:[%s545_s2 + $0x20] sm:$0xff] }
   0xe   :  { %305 = vmatpush.msra.mxu2 %v75_v6  ;;  %88 = vmatpush.msra.mxu0 %v75_v6  ;;  %v203_v38 = vld [vmem:[%s545_s2 + $0x28] sm:$0xff]  ;;  %v64_v40 = vld [vmem:[%s544_s0 + $0x70] sm:$0xff]  ;;  %v201_v42 = vld [vmem:[%s545_s2 + $0x18] sm:$0xff] }
   0xf   :  { %317 = vmatpush.msra.mxu3 %v211_v26  ;;  %216 = vmatpush.msra.mxu1 %v211_v26  ;;  %v56_v41 = vld [vmem:[%s544_s0 + $0x30] sm:$0xff]  ;;  %v199_v44 = vld [vmem:[%s545_s2 + $0x8] sm:$0xff]  ;;  %v65_v45 = vld [vmem:[%s544_s0 + $0x78] sm:$0xff] }
  0x10   :  { %306 = vmatpush.msra.mxu2 %v74_v7  ;;  %89 = vmatpush.msra.mxu0 %v74_v7  ;;  %v200_v43 = vld [vmem:[%s545_s2 + $0x10] sm:$0xff]  ;;  %v57_v46 = vld [vmem:[%s544_s0 + $0x38] sm:$0xff]  ;;  %v198_v47 = vld [vmem:[%s545_s2] sm:$0xff] }
  0x11   :  { %318 = vmatpush.msra.mxu3 %v210_v27  ;;  %217 = vmatpush.msra.mxu1 %v210_v27 }
  0x12   :  { %307 = vmatpush.msra.mxu2 %v73_v8  ;;  %90 = vmatpush.msra.mxu0 %v73_v8 }
  0x13   :  { %319 = vmatpush.msra.mxu3 %v209_v30  ;;  %218 = vmatpush.msra.mxu1 %v209_v30 }
  0x14   :  { %308 = vmatpush.msra.mxu2 %v72_v9  ;;  %91 = vmatpush.msra.mxu0 %v72_v9 }
  0x15   :  { %320 = vmatpush.msra.mxu3 %v208_v31  ;;  %219 = vmatpush.msra.mxu1 %v208_v31 }
  0x16   :  { %309 = vmatpush.msra.mxu2 %v71_v10  ;;  %92 = vmatpush.msra.mxu0 %v71_v10 }
  0x17   :  { %321 = vmatpush.msra.mxu3 %v207_v32  ;;  %220 = vmatpush.msra.mxu1 %v207_v32 }
  0x18   :  { %310 = vmatpush.msra.mxu2 %v70_v11  ;;  %93 = vmatpush.msra.mxu0 %v70_v11 }
  0x19   :  { %322 = vmatpush.msra.mxu3 %v206_v33  ;;  %221 = vmatpush.msra.mxu1 %v206_v33 }
  0x1a   :  { %311 = vmatpush.msra.mxu2 %v69_v12  ;;  %94 = vmatpush.msra.mxu0 %v69_v12 }
  0x1b   :  { %323 = vmatpush.msra.mxu3 %v205_v36  ;;  %222 = vmatpush.msra.mxu1 %v205_v36 }
  0x1c   :  { %312 = vmatpush.msra.mxu2 %v68_v13  ;;  %95 = vmatpush.msra.mxu0 %v68_v13 }
  0x1d   :  { %324 = vmatpush.msra.mxu3 %v204_v37  ;;  %223 = vmatpush.msra.mxu1 %v204_v37 }
  0x1e   :  { %313 = vmatpush.msra.mxu2 %v67_v14  ;;  %96 = vmatpush.msra.mxu0 %v67_v14 }
  0x1f   :  { %325 = vmatpush.msra.mxu3 %v203_v38  ;;  %224 = vmatpush.msra.mxu1 %v203_v38 }
  0x20   :  { %314 = vmatpush.msra.mxu2 %v66_v15  ;;  %97 = vmatpush.msra.mxu0 %v66_v15 }
  0x21   :  { %122 = vmatmul.f32.vlgmr.msra.gmra.mxu2 %v58_v16  ;;  %98 = vmatmul.f32.vlgmr.msra.gmra.mxu0 %v50_v17 }
  0x22   :  { %326 = vmatpush.msra.mxu3 %v202_v39  ;;  %225 = vmatpush.msra.mxu1 %v202_v39 }
  0x24   :  { %327 = vmatpush.msra.mxu3 %v201_v42  ;;  %226 = vmatpush.msra.mxu1 %v201_v42 }
  0x26   :  { %328 = vmatpush.msra.mxu3 %v200_v43  ;;  %227 = vmatpush.msra.mxu1 %v200_v43 }
  0x28   :  { %329 = vmatpush.msra.mxu3 %v199_v44  ;;  %228 = vmatpush.msra.mxu1 %v199_v44 }
  0x29   :  { %125 = vmatmul.f32.gmra.mxu2 %v59_v18  ;;  %101 = vmatmul.f32.gmra.mxu0 %v51_v19 }
  0x2a   :  { %330 = vmatpush.msra.mxu3 %v198_v47  ;;  %229 = vmatpush.msra.mxu1 %v198_v47 }
  0x31   :  { %128 = vmatmul.f32.gmra.mxu2 %v60_v20  ;;  %104 = vmatmul.f32.gmra.mxu0 %v52_v21 }
  0x39   :  { %131 = vmatmul.f32.gmra.mxu2 %v61_v22  ;;  %107 = vmatmul.f32.gmra.mxu0 %v53_v23 }
  0x41   :  { %134 = vmatmul.f32.gmra.mxu2 %v62_v28  ;;  %110 = vmatmul.f32.gmra.mxu0 %v54_v29 }
  0x49   :  { %137 = vmatmul.f32.gmra.mxu2 %v63_v34  ;;  %113 = vmatmul.f32.gmra.mxu0 %v55_v35 }
  0x51   :  { %140 = vmatmul.f32.gmra.mxu2 %v64_v40  ;;  %116 = vmatmul.f32.gmra.mxu0 %v56_v41 }
  0x59   :  { %143 = vmatmul.f32.gmra.mxu2 %v65_v45  ;;  %119 = vmatmul.f32.gmra.mxu0 %v57_v46 }
  0x9e   :  { %v99_v48 = vpop.f32.mrf.mxu0 }
  0x9f   :  { %230 = vmatmul.f32.vlgmr.msra.gmra.mxu1 %v99_v48 }
  0xa4   :  { %v123_v49 = vpop.f32.mrf.mxu2 }
  0xa5   :  { %254 = vmatmul.f32.vlgmr.msra.gmra.mxu3 %v123_v49 }
  0xa6   :  { %v102_v50 = vpop.f32.mrf.mxu0 }
  0xa7   :  { %233 = vmatmul.f32.gmra.mxu1 %v102_v50 }
  0xac   :  { %v126_v51 = vpop.f32.mrf.mxu2 }
  0xad   :  { %257 = vmatmul.f32.gmra.mxu3 %v126_v51 }
  0xae   :  { %v105_v52 = vpop.f32.mrf.mxu0 }
  0xaf   :  { %236 = vmatmul.f32.gmra.mxu1 %v105_v52 }
  0xb4   :  { %v129_v53 = vpop.f32.mrf.mxu2 }
  0xb5   :  { %260 = vmatmul.f32.gmra.mxu3 %v129_v53 }
  0xb6   :  { %v108_v54 = vpop.f32.mrf.mxu0 }
  0xb7   :  { %239 = vmatmul.f32.gmra.mxu1 %v108_v54 }
  0xbc   :  { %v132_v55 = vpop.f32.mrf.mxu2 }
  0xbd   :  { %263 = vmatmul.f32.gmra.mxu3 %v132_v55 }
  0xbe   :  { %v111_v56 = vpop.f32.mrf.mxu0 }
  0xbf   :  { %242 = vmatmul.f32.gmra.mxu1 %v111_v56 }
  0xc4   :  { %v135_v57 = vpop.f32.mrf.mxu2 }
  0xc5   :  { %266 = vmatmul.f32.gmra.mxu3 %v135_v57 }
  0xc6   :  { %v114_v58 = vpop.f32.mrf.mxu0 }
  0xc7   :  { %245 = vmatmul.f32.gmra.mxu1 %v114_v58 }
  0xcc   :  { %v138_v59 = vpop.f32.mrf.mxu2 }
  0xcd   :  { %269 = vmatmul.f32.gmra.mxu3 %v138_v59 }
  0xce   :  { %v117_v60 = vpop.f32.mrf.mxu0 }
  0xcf   :  { %248 = vmatmul.f32.gmra.mxu1 %v117_v60 }
  0xd4   :  { %v141_v61 = vpop.f32.mrf.mxu2 }
  0xd5   :  { %272 = vmatmul.f32.gmra.mxu3 %v141_v61 }
  0xd6   :  { %v120_v62 = vpop.f32.mrf.mxu0 }
  0xd7   :  { %251 = vmatmul.f32.gmra.mxu1 %v120_v62 }
  0xdc   :  { %v144_v63 = vpop.f32.mrf.mxu2 }
  0xdd   :  { %275 = vmatmul.f32.gmra.mxu3 %v144_v63 }
 0x11c   :  { %v231_v0 = vpop.f32.mrf.mxu1 }
 0x11d   :  { %279 = vst [vmem:[%s546_s3] sm:$0xff] %v231_v0 }
 0x124   :  { %v234_v1 = vpop.f32.mrf.mxu1 }
 0x125   :  { %280 = vst [vmem:[%s546_s3 + $0x8] sm:$0xff] %v234_v1 }
 0x128   :  { %v255_v2 = vpop.f32.mrf.mxu3 }
 0x129   :  { %287 = vst [vmem:[%s546_s3 + $0x40] sm:$0xff] %v255_v2 }
 0x12c   :  { %v237_v3 = vpop.f32.mrf.mxu1 }
 0x12d   :  { %281 = vst [vmem:[%s546_s3 + $0x10] sm:$0xff] %v237_v3 }
 0x130   :  { %v258_v4 = vpop.f32.mrf.mxu3 }
 0x131   :  { %288 = vst [vmem:[%s546_s3 + $0x48] sm:$0xff] %v258_v4 }
 0x134   :  { %v240_v5 = vpop.f32.mrf.mxu1 }
 0x135   :  { %282 = vst [vmem:[%s546_s3 + $0x18] sm:$0xff] %v240_v5 }
 0x138   :  { %v261_v6 = vpop.f32.mrf.mxu3 }
 0x139   :  { %289 = vst [vmem:[%s546_s3 + $0x50] sm:$0xff] %v261_v6 }
 0x13c   :  { %v243_v7 = vpop.f32.mrf.mxu1 }
 0x13d   :  { %283 = vst [vmem:[%s546_s3 + $0x20] sm:$0xff] %v243_v7 }
 0x140   :  { %v264_v8 = vpop.f32.mrf.mxu3 }
 0x141   :  { %290 = vst [vmem:[%s546_s3 + $0x58] sm:$0xff] %v264_v8 }
 0x144   :  { %v246_v9 = vpop.f32.mrf.mxu1 }
 0x145   :  { %284 = vst [vmem:[%s546_s3 + $0x28] sm:$0xff] %v246_v9 }
 0x148   :  { %v267_v10 = vpop.f32.mrf.mxu3 }
 0x149   :  { %291 = vst [vmem:[%s546_s3 + $0x60] sm:$0xff] %v267_v10 }
 0x14c   :  { %v249_v11 = vpop.f32.mrf.mxu1 }
 0x14d   :  { %285 = vst [vmem:[%s546_s3 + $0x30] sm:$0xff] %v249_v11 }
 0x150   :  { %v270_v12 = vpop.f32.mrf.mxu3 }
 0x151   :  { %292 = vst [vmem:[%s546_s3 + $0x68] sm:$0xff] %v270_v12 }
 0x154   :  { %v252_v13 = vpop.f32.mrf.mxu1 }
 0x155   :  { %286 = vst [vmem:[%s546_s3 + $0x38] sm:$0xff] %v252_v13 }
 0x158   :  { %v273_v14 = vpop.f32.mrf.mxu3 }
 0x159   :  { %293 = vst [vmem:[%s546_s3 + $0x70] sm:$0xff] %v273_v14 }
 0x160   :  { %v276_v15 = vpop.f32.mrf.mxu3 }
 0x161   :  { %294 = vst [vmem:[%s546_s3 + $0x78] sm:$0xff] %v276_v15 }

// kernel: sgae_forward.13
= control target key start
LH: loop header
LB: loop body
LE: loop exit
PB: predicated region body
PF: predicated region fallthrough
CT: control target
= control target key end

     0   :  { %s704_s1 = inlined_call_operand.vmem [shape: f32[128,128], index: 1, kind: input, shape index: {}, may-alias: {0,1}]   ;;  %s705_s3 = inlined_call_operand.vmem [shape: f32[128,128], index: 3, kind: input, shape index: {}, may-alias: {2,3}]   ;;  %s706_s0 = inlined_call_operand.vmem [shape: f32[128,128], index: 0, kind: input, shape index: {}, may-alias: {0,1}]   ;;  %s707_s2 = inlined_call_operand.vmem [shape: f32[128,128], index: 2, kind: input, shape index: {}, may-alias: {2,3}]   ;;  %s708_s4 = inlined_call_operand.vmem [shape: f32[128,128], index: 4, kind: output, shape index: {}]  }
   0x1   :  { %v48_v0 = vld [vmem:[%s704_s1 + $0x78] sm:$0xff]  ;;  %v47_v2 = vld [vmem:[%s704_s1 + $0x70] sm:$0xff]  ;;  %v46_v4 = vld [vmem:[%s704_s1 + $0x68] sm:$0xff] }
   0x2   :  { %v145_v1 = vld [vmem:[%s705_s3 + $0x78] sm:$0xff]  ;;  %343 = vmatpush.xpose.msra.mxu2 %v48_v0  ;;  %v144_v3 = vld [vmem:[%s705_s3 + $0x70] sm:$0xff]  ;;  %49 = vmatpush.xpose.msra.mxu0 %v48_v0  ;;  %v143_v5 = vld [vmem:[%s705_s3 + $0x68] sm:$0xff] }
   0x3   :  { %359 = vmatpush.xpose.msra.mxu3 %v145_v1  ;;  %146 = vmatpush.xpose.msra.mxu1 %v145_v1  ;;  %v45_v6 = vld [vmem:[%s704_s1 + $0x60] sm:$0xff]  ;;  %v44_v8 = vld [vmem:[%s704_s1 + $0x58] sm:$0xff]  ;;  %v43_v10 = vld [vmem:[%s704_s1 + $0x50] sm:$0xff] }
   0x4   :  { %v142_v7 = vld [vmem:[%s705_s3 + $0x60] sm:$0xff]  ;;  %v141_v9 = vld [vmem:[%s705_s3 + $0x58] sm:$0xff]  ;;  %v140_v11 = vld [vmem:[%s705_s3 + $0x50] sm:$0xff] }
   0x5   :  { %v42_v12 = vld [vmem:[%s704_s1 + $0x48] sm:$0xff]  ;;  %v41_v14 = vld [vmem:[%s704_s1 + $0x40] sm:$0xff]  ;;  %v40_v16 = vld [vmem:[%s704_s1 + $0x38] sm:$0xff] }
   0x6   :  { %344 = vmatpush.xpose.msra.mxu2 %v47_v2  ;;  %50 = vmatpush.xpose.msra.mxu0 %v47_v2  ;;  %v139_v13 = vld [vmem:[%s705_s3 + $0x48] sm:$0xff]  ;;  %v138_v15 = vld [vmem:[%s705_s3 + $0x40] sm:$0xff]  ;;  %v137_v17 = vld [vmem:[%s705_s3 + $0x38] sm:$0xff] }
   0x7   :  { %360 = vmatpush.xpose.msra.mxu3 %v144_v3  ;;  %147 = vmatpush.xpose.msra.mxu1 %v144_v3  ;;  %v39_v18 = vld [vmem:[%s704_s1 + $0x30] sm:$0xff]  ;;  %v38_v20 = vld [vmem:[%s704_s1 + $0x28] sm:$0xff]  ;;  %v37_v22 = vld [vmem:[%s704_s1 + $0x20] sm:$0xff] }
   0x8   :  { %v136_v19 = vld [vmem:[%s705_s3 + $0x30] sm:$0xff]  ;;  %v135_v21 = vld [vmem:[%s705_s3 + $0x28] sm:$0xff]  ;;  %v134_v23 = vld [vmem:[%s705_s3 + $0x20] sm:$0xff] }
   0x9   :  { %v36_v24 = vld [vmem:[%s704_s1 + $0x18] sm:$0xff]  ;;  %v35_v26 = vld [vmem:[%s704_s1 + $0x10] sm:$0xff]  ;;  %v34_v28 = vld [vmem:[%s704_s1 + $0x8] sm:$0xff] }
   0xa   :  { %345 = vmatpush.xpose.msra.mxu2 %v46_v4  ;;  %51 = vmatpush.xpose.msra.mxu0 %v46_v4  ;;  %v133_v25 = vld [vmem:[%s705_s3 + $0x18] sm:$0xff]  ;;  %v132_v27 = vld [vmem:[%s705_s3 + $0x10] sm:$0xff]  ;;  %v131_v29 = vld [vmem:[%s705_s3 + $0x8] sm:$0xff] }
   0xb   :  { %361 = vmatpush.xpose.msra.mxu3 %v143_v5  ;;  %148 = vmatpush.xpose.msra.mxu1 %v143_v5  ;;  %v33_v30 = vld [vmem:[%s704_s1] sm:$0xff]  ;;  %v26_v36 = vld [vmem:[%s706_s0 + $0x48] sm:$0xff]  ;;  %v27_v40 = vld [vmem:[%s706_s0 + $0x50] sm:$0xff] }
   0xc   :  { %v130_v31 = vld [vmem:[%s705_s3] sm:$0xff]  ;;  %v123_v37 = vld [vmem:[%s707_s2 + $0x48] sm:$0xff]  ;;  %v124_v41 = vld [vmem:[%s707_s2 + $0x50] sm:$0xff] }
   0xd   :  { %v25_v32 = vld [vmem:[%s706_s0 + $0x40] sm:$0xff]  ;;  %v18_v38 = vld [vmem:[%s706_s0 + $0x8] sm:$0xff]  ;;  %v19_v42 = vld [vmem:[%s706_s0 + $0x10] sm:$0xff] }
   0xe   :  { %346 = vmatpush.xpose.msra.mxu2 %v45_v6  ;;  %52 = vmatpush.xpose.msra.mxu0 %v45_v6  ;;  %v122_v33 = vld [vmem:[%s707_s2 + $0x40] sm:$0xff]  ;;  %v115_v39 = vld [vmem:[%s707_s2 + $0x8] sm:$0xff]  ;;  %v116_v43 = vld [vmem:[%s707_s2 + $0x10] sm:$0xff] }
   0xf   :  { %362 = vmatpush.xpose.msra.mxu3 %v142_v7  ;;  %149 = vmatpush.xpose.msra.mxu1 %v142_v7  ;;  %v17_v34 = vld [vmem:[%s706_s0] sm:$0xff]  ;;  %v28_v44 = vld [vmem:[%s706_s0 + $0x58] sm:$0xff]  ;;  %v30_v52 = vld [vmem:[%s706_s0 + $0x68] sm:$0xff] }
  0x10   :  { %v114_v35 = vld [vmem:[%s707_s2] sm:$0xff]  ;;  %v125_v45 = vld [vmem:[%s707_s2 + $0x58] sm:$0xff]  ;;  %v127_v53 = vld [vmem:[%s707_s2 + $0x68] sm:$0xff] }
  0x11   :  { %v20_v46 = vld [vmem:[%s706_s0 + $0x18] sm:$0xff]  ;;  %v29_v48 = vld [vmem:[%s706_s0 + $0x60] sm:$0xff]  ;;  %v22_v54 = vld [vmem:[%s706_s0 + $0x28] sm:$0xff] }
  0x12   :  { %347 = vmatpush.xpose.msra.mxu2 %v44_v8  ;;  %53 = vmatpush.xpose.msra.mxu0 %v44_v8  ;;  %v117_v47 = vld [vmem:[%s707_s2 + $0x18] sm:$0xff]  ;;  %v126_v49 = vld [vmem:[%s707_s2 + $0x60] sm:$0xff]  ;;  %v119_v55 = vld [vmem:[%s707_s2 + $0x28] sm:$0xff] }
  0x13   :  { %363 = vmatpush.xpose.msra.mxu3 %v141_v9  ;;  %150 = vmatpush.xpose.msra.mxu1 %v141_v9  ;;  %v21_v50 = vld [vmem:[%s706_s0 + $0x20] sm:$0xff]  ;;  %v31_v56 = vld [vmem:[%s706_s0 + $0x70] sm:$0xff]  ;;  %v32_v60 = vld [vmem:[%s706_s0 + $0x78] sm:$0xff] }
  0x14   :  { %v118_v51 = vld [vmem:[%s707_s2 + $0x20] sm:$0xff]  ;;  %v128_v57 = vld [vmem:[%s707_s2 + $0x70] sm:$0xff]  ;;  %v129_v61 = vld [vmem:[%s707_s2 + $0x78] sm:$0xff] }
  0x15   :  { %v23_v58 = vld [vmem:[%s706_s0 + $0x30] sm:$0xff]  ;;  %v24_v62 = vld [vmem:[%s706_s0 + $0x38] sm:$0xff] }
  0x16   :  { %348 = vmatpush.xpose.msra.mxu2 %v43_v10  ;;  %54 = vmatpush.xpose.msra.mxu0 %v43_v10  ;;  %v120_v59 = vld [vmem:[%s707_s2 + $0x30] sm:$0xff]  ;;  %v121_v63 = vld [vmem:[%s707_s2 + $0x38] sm:$0xff] }
  0x17   :  { %364 = vmatpush.xpose.msra.mxu3 %v140_v11  ;;  %151 = vmatpush.xpose.msra.mxu1 %v140_v11 }
  0x1a   :  { %349 = vmatpush.xpose.msra.mxu2 %v42_v12  ;;  %55 = vmatpush.xpose.msra.mxu0 %v42_v12 }
  0x1b   :  { %365 = vmatpush.xpose.msra.mxu3 %v139_v13  ;;  %152 = vmatpush.xpose.msra.mxu1 %v139_v13 }
  0x1e   :  { %350 = vmatpush.xpose.msra.mxu2 %v41_v14  ;;  %56 = vmatpush.xpose.msra.mxu0 %v41_v14 }
  0x1f   :  { %366 = vmatpush.xpose.msra.mxu3 %v138_v15  ;;  %153 = vmatpush.xpose.msra.mxu1 %v138_v15 }
  0x22   :  { %351 = vmatpush.xpose.msra.mxu2 %v40_v16  ;;  %57 = vmatpush.xpose.msra.mxu0 %v40_v16 }
  0x23   :  { %367 = vmatpush.xpose.msra.mxu3 %v137_v17  ;;  %154 = vmatpush.xpose.msra.mxu1 %v137_v17 }
  0x26   :  { %352 = vmatpush.xpose.msra.mxu2 %v39_v18  ;;  %58 = vmatpush.xpose.msra.mxu0 %v39_v18 }
  0x27   :  { %368 = vmatpush.xpose.msra.mxu3 %v136_v19  ;;  %155 = vmatpush.xpose.msra.mxu1 %v136_v19 }
  0x2a   :  { %353 = vmatpush.xpose.msra.mxu2 %v38_v20  ;;  %59 = vmatpush.xpose.msra.mxu0 %v38_v20 }
  0x2b   :  { %369 = vmatpush.xpose.msra.mxu3 %v135_v21  ;;  %156 = vmatpush.xpose.msra.mxu1 %v135_v21 }
  0x2e   :  { %354 = vmatpush.xpose.msra.mxu2 %v37_v22  ;;  %60 = vmatpush.xpose.msra.mxu0 %v37_v22 }
  0x2f   :  { %370 = vmatpush.xpose.msra.mxu3 %v134_v23  ;;  %157 = vmatpush.xpose.msra.mxu1 %v134_v23 }
  0x32   :  { %355 = vmatpush.xpose.msra.mxu2 %v36_v24  ;;  %61 = vmatpush.xpose.msra.mxu0 %v36_v24 }
  0x33   :  { %371 = vmatpush.xpose.msra.mxu3 %v133_v25  ;;  %158 = vmatpush.xpose.msra.mxu1 %v133_v25 }
  0x36   :  { %356 = vmatpush.xpose.msra.mxu2 %v35_v26  ;;  %62 = vmatpush.xpose.msra.mxu0 %v35_v26 }
  0x37   :  { %372 = vmatpush.xpose.msra.mxu3 %v132_v27  ;;  %159 = vmatpush.xpose.msra.mxu1 %v132_v27 }
  0x3a   :  { %357 = vmatpush.xpose.msra.mxu2 %v34_v28  ;;  %63 = vmatpush.xpose.msra.mxu0 %v34_v28 }
  0x3b   :  { %373 = vmatpush.xpose.msra.mxu3 %v131_v29  ;;  %160 = vmatpush.xpose.msra.mxu1 %v131_v29 }
  0x3e   :  { %358 = vmatpush.xpose.msra.mxu2 %v33_v30  ;;  %64 = vmatpush.xpose.msra.mxu0 %v33_v30 }
  0x3f   :  { %374 = vmatpush.xpose.msra.mxu3 %v130_v31  ;;  %161 = vmatpush.xpose.msra.mxu1 %v130_v31 }
  0x41   :  { %89 = vmatmul.f32.vlgmr.msra.gmra.mxu2 %v25_v32  ;;  %65 = vmatmul.f32.vlgmr.msra.gmra.mxu0 %v17_v34 }
  0x42   :  { %186 = vmatmul.f32.vlgmr.msra.gmra.mxu3 %v122_v33  ;;  %162 = vmatmul.f32.vlgmr.msra.gmra.mxu1 %v114_v35 }
  0x49   :  { %92 = vmatmul.f32.gmra.mxu2 %v26_v36  ;;  %68 = vmatmul.f32.gmra.mxu0 %v18_v38 }
  0x4a   :  { %189 = vmatmul.f32.gmra.mxu3 %v123_v37  ;;  %165 = vmatmul.f32.gmra.mxu1 %v115_v39 }
  0x51   :  { %95 = vmatmul.f32.gmra.mxu2 %v27_v40  ;;  %71 = vmatmul.f32.gmra.mxu0 %v19_v42 }
  0x52   :  { %192 = vmatmul.f32.gmra.mxu3 %v124_v41  ;;  %168 = vmatmul.f32.gmra.mxu1 %v116_v43 }
  0x59   :  { %98 = vmatmul.f32.gmra.mxu2 %v28_v44  ;;  %74 = vmatmul.f32.gmra.mxu0 %v20_v46 }
  0x5a   :  { %195 = vmatmul.f32.gmra.mxu3 %v125_v45  ;;  %171 = vmatmul.f32.gmra.mxu1 %v117_v47 }
  0x61   :  { %101 = vmatmul.f32.gmra.mxu2 %v29_v48  ;;  %77 = vmatmul.f32.gmra.mxu0 %v21_v50 }
  0x62   :  { %198 = vmatmul.f32.gmra.mxu3 %v126_v49  ;;  %174 = vmatmul.f32.gmra.mxu1 %v118_v51 }
  0x69   :  { %104 = vmatmul.f32.gmra.mxu2 %v30_v52  ;;  %80 = vmatmul.f32.gmra.mxu0 %v22_v54 }
  0x6a   :  { %201 = vmatmul.f32.gmra.mxu3 %v127_v53  ;;  %177 = vmatmul.f32.gmra.mxu1 %v119_v55 }
  0x71   :  { %107 = vmatmul.f32.gmra.mxu2 %v31_v56  ;;  %83 = vmatmul.f32.gmra.mxu0 %v23_v58 }
  0x72   :  { %204 = vmatmul.f32.gmra.mxu3 %v128_v57  ;;  %180 = vmatmul.f32.gmra.mxu1 %v120_v59 }
  0x79   :  { %110 = vmatmul.f32.gmra.mxu2 %v32_v60  ;;  %86 = vmatmul.f32.gmra.mxu0 %v24_v62 }
  0x7a   :  { %207 = vmatmul.f32.gmra.mxu3 %v129_v61  ;;  %183 = vmatmul.f32.gmra.mxu1 %v121_v63 }
  0xbe   :  { %v66_v0 = vpop.f32.mrf.mxu0 }
  0xbf   :  { %v163_v1 = vpop.f32.mrf.mxu1  ;;  %v211_v2 = vmul.f32 0.5, %v66_v0 }
  0xc0   :  { %v243_v3 = vmul.f32 0.5, %v163_v1 }
  0xc1   :  { %375 = vtanh.f32 %v211_v2 }
  0xc2   :  { %377 = vtanh.f32 %v243_v3 }
  0xc4   :  { %v90_v4 = vpop.f32.mrf.mxu2 }
  0xc5   :  { %v187_v5 = vpop.f32.mrf.mxu3  ;;  %v219_v6 = vmul.f32 0.5, %v90_v4 }
  0xc6   :  { %v251_v7 = vmul.f32 0.5, %v187_v5  ;;  %v69_v8 = vpop.f32.mrf.mxu0 }
  0xc7   :  { %379 = vtanh.f32 %v219_v6  ;;  %v166_v9 = vpop.f32.mrf.mxu1  ;;  %v376_v10 = vpop.eup %375  ;;  %v212_v11 = vmul.f32 0.5, %v69_v8 }
  0xc8   :  { %381 = vtanh.f32 %v251_v7  ;;  %v244_v12 = vmul.f32 0.5, %v166_v9  ;;  %v378_v13 = vpop.eup %377 }
  0xc9   :  { %v275_v14 = vadd.f32 %v378_v13, %v376_v10  ;;  %383 = vtanh.f32 %v212_v11 }
  0xca   :  { %385 = vtanh.f32 %v244_v12 }
  0xcb   :  { %v291_v15 = vmul.f32 0.5, %v275_v14 }
  0xcc   :  { %v93_v16 = vpop.f32.mrf.mxu2 }
  0xcd   :  { %v190_v17 = vpop.f32.mrf.mxu3  ;;  %v380_v18 = vpop.eup %379  ;;  %v220_v19 = vmul.f32 0.5, %v93_v16  ;;  %v307_v22 = vadd.f32 1.0, %v291_v15 }
  0xce   :  { %v252_v20 = vmul.f32 0.5, %v190_v17  ;;  %v382_v21 = vpop.eup %381  ;;  %v72_v24 = vpop.f32.mrf.mxu0 }
  0xcf   :  { %v283_v23 = vadd.f32 %v382_v21, %v380_v18  ;;  %387 = vtanh.f32 %v220_v19  ;;  %v169_v25 = vpop.f32.mrf.mxu1  ;;  %v384_v26 = vpop.eup %383  ;;  %323 = vst [vmem:[%s708_s4] sm:$0xff] %v307_v22  ;;  %v213_v27 = vmul.f32 0.5, %v72_v24 }
  0xd0   :  { %389 = vtanh.f32 %v252_v20  ;;  %v245_v28 = vmul.f32 0.5, %v169_v25  ;;  %v386_v29 = vpop.eup %385 }
  0xd1   :  { %v299_v30 = vmul.f32 0.5, %v283_v23  ;;  %v276_v31 = vadd.f32 %v386_v29, %v384_v26  ;;  %391 = vtanh.f32 %v213_v27 }
  0xd2   :  { %393 = vtanh.f32 %v245_v28 }
  0xd3   :  { %v315_v32 = vadd.f32 1.0, %v299_v30  ;;  %v292_v33 = vmul.f32 0.5, %v276_v31 }
  0xd4   :  { %v96_v34 = vpop.f32.mrf.mxu2 }
  0xd5   :  { %v193_v35 = vpop.f32.mrf.mxu3  ;;  %v388_v36 = vpop.eup %387  ;;  %331 = vst [vmem:[%s708_s4 + $0x40] sm:$0xff] %v315_v32  ;;  %v221_v37 = vmul.f32 0.5, %v96_v34  ;;  %v308_v40 = vadd.f32 1.0, %v292_v33 }
  0xd6   :  { %v253_v38 = vmul.f32 0.5, %v193_v35  ;;  %v390_v39 = vpop.eup %389  ;;  %v75_v42 = vpop.f32.mrf.mxu0 }
  0xd7   :  { %v284_v41 = vadd.f32 %v390_v39, %v388_v36  ;;  %395 = vtanh.f32 %v221_v37  ;;  %v172_v43 = vpop.f32.mrf.mxu1  ;;  %v392_v44 = vpop.eup %391  ;;  %324 = vst [vmem:[%s708_s4 + $0x8] sm:$0xff] %v308_v40  ;;  %v214_v45 = vmul.f32 0.5, %v75_v42 }
  0xd8   :  { %397 = vtanh.f32 %v253_v38  ;;  %v246_v46 = vmul.f32 0.5, %v172_v43  ;;  %v394_v47 = vpop.eup %393 }
  0xd9   :  { %v300_v48 = vmul.f32 0.5, %v284_v41  ;;  %v277_v49 = vadd.f32 %v394_v47, %v392_v44  ;;  %399 = vtanh.f32 %v214_v45 }
  0xda   :  { %401 = vtanh.f32 %v246_v46 }
  0xdb   :  { %v316_v50 = vadd.f32 1.0, %v300_v48  ;;  %v293_v51 = vmul.f32 0.5, %v277_v49 }
  0xdc   :  { %v99_v52 = vpop.f32.mrf.mxu2 }
  0xdd   :  { %v196_v53 = vpop.f32.mrf.mxu3  ;;  %v396_v54 = vpop.eup %395  ;;  %332 = vst [vmem:[%s708_s4 + $0x48] sm:$0xff] %v316_v50  ;;  %v222_v55 = vmul.f32 0.5, %v99_v52  ;;  %v309_v58 = vadd.f32 1.0, %v293_v51 }
  0xde   :  { %v254_v56 = vmul.f32 0.5, %v196_v53  ;;  %v398_v57 = vpop.eup %397  ;;  %v78_v60 = vpop.f32.mrf.mxu0 }
  0xdf   :  { %v285_v59 = vadd.f32 %v398_v57, %v396_v54  ;;  %403 = vtanh.f32 %v222_v55  ;;  %v175_v61 = vpop.f32.mrf.mxu1  ;;  %v400_v62 = vpop.eup %399  ;;  %325 = vst [vmem:[%s708_s4 + $0x10] sm:$0xff] %v309_v58  ;;  %v215_v63 = vmul.f32 0.5, %v78_v60 }
  0xe0   :  { %405 = vtanh.f32 %v254_v56  ;;  %v247_v0 = vmul.f32 0.5, %v175_v61  ;;  %v402_v1 = vpop.eup %401 }
  0xe1   :  { %v301_v2 = vmul.f32 0.5, %v285_v59  ;;  %v278_v3 = vadd.f32 %v402_v1, %v400_v62  ;;  %407 = vtanh.f32 %v215_v63 }
  0xe2   :  { %409 = vtanh.f32 %v247_v0 }
  0xe3   :  { %v317_v4 = vadd.f32 1.0, %v301_v2  ;;  %v294_v5 = vmul.f32 0.5, %v278_v3 }
  0xe4   :  { %v102_v6 = vpop.f32.mrf.mxu2 }
  0xe5   :  { %v199_v7 = vpop.f32.mrf.mxu3  ;;  %v404_v8 = vpop.eup %403  ;;  %333 = vst [vmem:[%s708_s4 + $0x50] sm:$0xff] %v317_v4  ;;  %v223_v9 = vmul.f32 0.5, %v102_v6  ;;  %v310_v12 = vadd.f32 1.0, %v294_v5 }
  0xe6   :  { %v255_v10 = vmul.f32 0.5, %v199_v7  ;;  %v406_v11 = vpop.eup %405  ;;  %v81_v14 = vpop.f32.mrf.mxu0 }
  0xe7   :  { %v286_v13 = vadd.f32 %v406_v11, %v404_v8  ;;  %411 = vtanh.f32 %v223_v9  ;;  %v178_v15 = vpop.f32.mrf.mxu1  ;;  %v408_v16 = vpop.eup %407  ;;  %326 = vst [vmem:[%s708_s4 + $0x18] sm:$0xff] %v310_v12  ;;  %v216_v17 = vmul.f32 0.5, %v81_v14 }
  0xe8   :  { %413 = vtanh.f32 %v255_v10  ;;  %v248_v18 = vmul.f32 0.5, %v178_v15  ;;  %v410_v19 = vpop.eup %409 }
  0xe9   :  { %v302_v20 = vmul.f32 0.5, %v286_v13  ;;  %v279_v21 = vadd.f32 %v410_v19, %v408_v16  ;;  %415 = vtanh.f32 %v216_v17 }
  0xea   :  { %417 = vtanh.f32 %v248_v18 }
  0xeb   :  { %v318_v22 = vadd.f32 1.0, %v302_v20  ;;  %v295_v23 = vmul.f32 0.5, %v279_v21 }
  0xec   :  { %v105_v24 = vpop.f32.mrf.mxu2 }
  0xed   :  { %v202_v25 = vpop.f32.mrf.mxu3  ;;  %v412_v26 = vpop.eup %411  ;;  %334 = vst [vmem:[%s708_s4 + $0x58] sm:$0xff] %v318_v22  ;;  %v224_v27 = vmul.f32 0.5, %v105_v24  ;;  %v311_v30 = vadd.f32 1.0, %v295_v23 }
  0xee   :  { %v256_v28 = vmul.f32 0.5, %v202_v25  ;;  %v414_v29 = vpop.eup %413  ;;  %v84_v32 = vpop.f32.mrf.mxu0 }
  0xef   :  { %v287_v31 = vadd.f32 %v414_v29, %v412_v26  ;;  %419 = vtanh.f32 %v224_v27  ;;  %v181_v33 = vpop.f32.mrf.mxu1  ;;  %v416_v34 = vpop.eup %415  ;;  %327 = vst [vmem:[%s708_s4 + $0x20] sm:$0xff] %v311_v30  ;;  %v217_v35 = vmul.f32 0.5, %v84_v32 }
  0xf0   :  { %421 = vtanh.f32 %v256_v28  ;;  %v249_v36 = vmul.f32 0.5, %v181_v33  ;;  %v418_v37 = vpop.eup %417 }
  0xf1   :  { %v303_v38 = vmul.f32 0.5, %v287_v31  ;;  %v280_v39 = vadd.f32 %v418_v37, %v416_v34  ;;  %423 = vtanh.f32 %v217_v35 }
  0xf2   :  { %425 = vtanh.f32 %v249_v36 }
  0xf3   :  { %v319_v40 = vadd.f32 1.0, %v303_v38  ;;  %v296_v41 = vmul.f32 0.5, %v280_v39 }
  0xf4   :  { %v108_v42 = vpop.f32.mrf.mxu2 }
  0xf5   :  { %v205_v43 = vpop.f32.mrf.mxu3  ;;  %v420_v44 = vpop.eup %419  ;;  %335 = vst [vmem:[%s708_s4 + $0x60] sm:$0xff] %v319_v40  ;;  %v225_v45 = vmul.f32 0.5, %v108_v42  ;;  %v312_v48 = vadd.f32 1.0, %v296_v41 }
  0xf6   :  { %v257_v46 = vmul.f32 0.5, %v205_v43  ;;  %v422_v47 = vpop.eup %421  ;;  %v87_v50 = vpop.f32.mrf.mxu0 }
  0xf7   :  { %v288_v49 = vadd.f32 %v422_v47, %v420_v44  ;;  %427 = vtanh.f32 %v225_v45  ;;  %v184_v51 = vpop.f32.mrf.mxu1  ;;  %v424_v52 = vpop.eup %423  ;;  %328 = vst [vmem:[%s708_s4 + $0x28] sm:$0xff] %v312_v48  ;;  %v218_v53 = vmul.f32 0.5, %v87_v50 }
  0xf8   :  { %429 = vtanh.f32 %v257_v46  ;;  %v250_v54 = vmul.f32 0.5, %v184_v51  ;;  %v426_v55 = vpop.eup %425 }
  0xf9   :  { %v304_v56 = vmul.f32 0.5, %v288_v49  ;;  %v281_v57 = vadd.f32 %v426_v55, %v424_v52  ;;  %431 = vtanh.f32 %v218_v53 }
  0xfa   :  { %433 = vtanh.f32 %v250_v54 }
  0xfb   :  { %v320_v58 = vadd.f32 1.0, %v304_v56  ;;  %v297_v59 = vmul.f32 0.5, %v281_v57 }
  0xfc   :  { %v111_v60 = vpop.f32.mrf.mxu2 }
  0xfd   :  { %v208_v61 = vpop.f32.mrf.mxu3  ;;  %v428_v62 = vpop.eup %427  ;;  %336 = vst [vmem:[%s708_s4 + $0x68] sm:$0xff] %v320_v58  ;;  %v226_v63 = vmul.f32 0.5, %v111_v60  ;;  %v313_v2 = vadd.f32 1.0, %v297_v59 }
  0xfe   :  { %v258_v0 = vmul.f32 0.5, %v208_v61  ;;  %v430_v1 = vpop.eup %429 }
  0xff   :  { %v289_v3 = vadd.f32 %v430_v1, %v428_v62  ;;  %435 = vtanh.f32 %v226_v63  ;;  %v432_v4 = vpop.eup %431  ;;  %329 = vst [vmem:[%s708_s4 + $0x30] sm:$0xff] %v313_v2 }
 0x100   :  { %437 = vtanh.f32 %v258_v0  ;;  %v434_v5 = vpop.eup %433 }
 0x101   :  { %v305_v6 = vmul.f32 0.5, %v289_v3  ;;  %v282_v7 = vadd.f32 %v434_v5, %v432_v4 }
 0x103   :  { %v321_v8 = vadd.f32 1.0, %v305_v6  ;;  %v298_v9 = vmul.f32 0.5, %v282_v7 }
 0x105   :  { %v436_v10 = vpop.eup %435  ;;  %337 = vst [vmem:[%s708_s4 + $0x70] sm:$0xff] %v321_v8  ;;  %v314_v12 = vadd.f32 1.0, %v298_v9 }
 0x106   :  { %v438_v11 = vpop.eup %437 }
 0x107   :  { %v290_v13 = vadd.f32 %v438_v11, %v436_v10  ;;  %330 = vst [vmem:[%s708_s4 + $0x38] sm:$0xff] %v314_v12 }
 0x109   :  { %v306_v14 = vmul.f32 0.5, %v290_v13 }
 0x10b   :  { %v322_v15 = vadd.f32 1.0, %v306_v14 }
 0x10d   :  { %338 = vst [vmem:[%s708_s4 + $0x78] sm:$0xff] %v322_v15 }

</bundles_post_ra>
